<compile_context>
chip_gen: v7x
topology: tpu7x:2x2x1
jax: 0.10.0
libtpu: 0.0.40
codegen_flags: <defaults>
</compile_context>

<pallas_src>
import functools

import jax
import jax.numpy as jnp
from jax.experimental import pallas as pl
from jax.experimental.pallas import tpu as pltpu


def _classifier_kernel(x_ref, w_ref, b_ref, o_ref, acc_ref, *, inv_n):
    # x_ref: (TB, TN, Dpack)   w_ref: (Dpack, Cpad)   b_ref: (1, Cpad)
    # o_ref: (TB, Cpad)        acc_ref: (TB, Dpack) f32 scratch
    n = pl.program_id(1)

    @pl.when(n == 0)
    def _():
        acc_ref[...] = jnp.zeros_like(acc_ref)

    # Streaming f32 accumulation over the packed token axis (widen at the
    # accumulate only -- no full-tile astype).
    acc_ref[...] += jnp.sum(x_ref[...], axis=1, dtype=jnp.float32)

    @pl.when(n == pl.num_programs(1) - 1)
    def _():
        mean = acc_ref[...] * inv_n                                  # (TB, Dpack)
        logits = jnp.dot(mean, w_ref[...].astype(jnp.float32),
                         preferred_element_type=jnp.float32)         # (TB, Cpad)
        o_ref[...] = (logits + b_ref[...].astype(jnp.float32)).astype(o_ref.dtype)


def _choose_batch_tile(b, cap=128):
    # Tile over B that is either the full batch or a multiple of 8 dividing B
    # (keeps the (TB, Cpad) output block layout-legal and avoids partial blocks).
    if b <= cap:
        return b
    t = (cap // 8) * 8
    while t >= 8:
        if b % t == 0:
            return t
        t -= 8
    return b


def _choose_token_tile(npack, cap):
    # Tile over the packed token axis: full axis, or a multiple of 8 that
    # divides it (no partial blocks, satisfies the (8, 128) constraint).
    if npack <= cap:
        return npack
    t = (min(cap, npack) // 8) * 8
    while t >= 8:
        if npack % t == 0:
            return t
        t -= 8
    return npack


def standard_classifier(x, weight, bias):
    """x: (B, ..., D). weight: (D, C). bias: (C,).

    Returns logits of shape (B, C), matching
    nn.Linear(D, C)(x.reshape(B, -1, D).mean(dim=1)).
    """
    B = x.shape[0]
    D = x.shape[-1]
    C = weight.shape[-1]

    x3 = x.reshape(B, -1, D)
    N = x3.shape[1]

    # ---- lane packing: (B, N, D) -> (B, N//k, k*D), k = 128 // D ----------
    if D < 128 and 128 % D == 0:
        k = 128 // D
        if N % k != 0:
            k = 1
    else:
        k = 1
    Dpack = k * D
    Npack = N // k
    x_packed = x3.reshape(B, Npack, Dpack)        # free view (contiguous)

    # ---- lane-dense output: pad C up to a multiple of 128 ------------------
    Cpad = ((C + 127) // 128) * 128
    # Fold the k feature groups into the matmul: acc @ [W; W; ...; W] == sum_j acc_j @ W
    w_t = jnp.tile(weight, (k, 1))                # (k*D, C)
    if Cpad != C:
        w_t = jnp.pad(w_t, ((0, 0), (0, Cpad - C)))
        b_p = jnp.pad(bias, (0, Cpad - C))
    else:
        b_p = bias
    b2 = b_p.reshape(1, Cpad)

    # ---- tile sizes (conservative VMEM budget, safe on v5e/v6e/v7x) --------
    TB = _choose_batch_tile(B)
    x_itemsize = jnp.dtype(x.dtype).itemsize
    per_buffer_budget = 8 * 1024 * 1024           # ~8 MiB per x buffer (x2 double-buffered)
    tn_cap = max(8, per_buffer_budget // max(1, TB * Dpack * x_itemsize))
    TN = _choose_token_tile(Npack, tn_cap)

    grid = (pl.cdiv(B, TB), pl.cdiv(Npack, TN))

    kernel = functools.partial(_classifier_kernel, inv_n=float(1.0 / N))

    out = pl.pallas_call(
        kernel,
        out_shape=jax.ShapeDtypeStruct((B, Cpad), x.dtype),
        grid=grid,
        in_specs=[
            pl.BlockSpec((TB, TN, Dpack), lambda b, n: (b, n, 0)),   # streamed
            pl.BlockSpec((Dpack, Cpad), lambda b, n: (0, 0)),        # resident
            pl.BlockSpec((1, Cpad), lambda b, n: (0, 0)),            # resident
        ],
        out_specs=pl.BlockSpec((TB, Cpad), lambda b, n: (b, 0)),
        scratch_shapes=[pltpu.VMEM((TB, Dpack), jnp.float32)],
        compiler_params=pltpu.CompilerParams(
            dimension_semantics=("parallel", "arbitrary"),
            vmem_limit_bytes=32 * 1024 * 1024,
        ),
    )(x_packed, w_t, b2)

    return out[:, :C]


def init_params(key, in_features, num_classes, dtype=jnp.float32):
    # Deterministic init mimicking torch.nn.Linear's default:
    # U(-1/sqrt(in_features), 1/sqrt(in_features)) for both weight and bias.
    kw, kb = jax.random.split(key)
    bound = 1.0 / (in_features ** 0.5)
    # Stored as (D, C) so the kernel does mean @ W directly
    # (torch stores (C, D) and computes x @ W^T -- numerically identical).
    weight = jax.random.uniform(kw, (in_features, num_classes),
                                minval=-bound, maxval=bound, dtype=dtype)
    bias = jax.random.uniform(kb, (num_classes,),
                              minval=-bound, maxval=bound, dtype=dtype)
    return weight, bias


if __name__ == "__main__":
    key = jax.random.PRNGKey(0)
    k_x, k_p = jax.random.split(key)

    # Small shapes consistent with the module: input_shape=(2, 4, 8, 32),
    # i.e. B=2, D=input_shape[-1]=32, num_classes=10.
    B, H, W, D = 2, 4, 8, 32
    num_classes = 10

    x = jax.random.normal(k_x, (B, H, W, D), dtype=jnp.float32)
    weight, bias = init_params(k_p, D, num_classes)

    out = standard_classifier(x, weight, bias)
    out = jax.block_until_ready(out)

    # Reference check in plain JAX (same math as the PyTorch forward).
    ref = x.reshape(B, -1, D).mean(axis=1) @ weight + bias
    assert out.shape == (B, num_classes)
    assert jnp.allclose(out, ref, atol=1e-4, rtol=1e-4)

    print("KERNEL_OK")
</pallas_src>

<mosaic_0001>
module attributes {stable_mosaic.version = 11 : i64} {
  func.func @_classifier_kernel(%arg0: i32, %arg1: i32, %arg2: memref<2x8x128xf32, #tpu.memory_space<vmem>>, %arg3: memref<128x128xf32, #tpu.memory_space<vmem>>, %arg4: memref<1x128xf32, #tpu.memory_space<vmem>>, %arg5: memref<2x128xf32, #tpu.memory_space<vmem>>, %arg6: memref<2x128xf32, #tpu.memory_space<vmem>>) attributes {dimension_semantics = [#tpu.dimension_semantics<parallel>, #tpu.dimension_semantics<arbitrary>], iteration_bounds = array<i64: 1, 1>, scalar_prefetch = 0 : i64, scratch_operands = 1 : i64, tpu.core_type = #tpu.core_type<tc>, window_params = [{transform_indices = @transform_0, window_bounds = array<i64: 2, 8, 128>}, {pipeline_mode = #tpu.pipeline_mode<synchronous>, transform_indices = @transform_1, window_bounds = array<i64: 128, 128>}, {pipeline_mode = #tpu.pipeline_mode<synchronous>, transform_indices = @transform_2, window_bounds = array<i64: 1, 128>}, {transform_indices = @transform_3, window_bounds = array<i64: 2, 128>}]} {
    %c0_i32 = arith.constant 0 : i32
    %0 = arith.cmpi eq, %arg1, %c0_i32 : i32
    %1 = arith.extui %0 : i1 to i32
    %c0_i32_0 = arith.constant 0 : i32
    %2 = arith.cmpi ne, %1, %c0_i32_0 : i32
    scf.if %2 {
      %cst_9 = arith.constant 0.000000e+00 : f32
      %11 = vector.broadcast %cst_9 : f32 to vector<2x128xf32>
      %c0_10 = arith.constant 0 : index
      %c0_11 = arith.constant 0 : index
      %12 = vector.load %arg6[%c0_10, %c0_11] : memref<2x128xf32, #tpu.memory_space<vmem>>, vector<2x128xf32>
      tpu.vector_store %arg6[%c0_10, %c0_11], %11 {strides = array<i32>} : memref<2x128xf32, #tpu.memory_space<vmem>>, vector<2x128xf32>,
    } else {
    }
    %c0 = arith.constant 0 : index
    %c0_1 = arith.constant 0 : index
    %3 = vector.load %arg6[%c0, %c0_1] : memref<2x128xf32, #tpu.memory_space<vmem>>, vector<2x128xf32>
    %c0_2 = arith.constant 0 : index
    %c0_3 = arith.constant 0 : index
    %c0_4 = arith.constant 0 : index
    %4 = vector.load %arg2[%c0_2, %c0_3, %c0_4] : memref<2x8x128xf32, #tpu.memory_space<vmem>>, vector<2x8x128xf32>
    %cst = arith.constant dense<0.000000e+00> : vector<2x128xf32>
    %5 = vector.multi_reduction <add>, %4, %cst [1] : vector<2x8x128xf32> to vector<2x128xf32>
    %6 = arith.addf %3, %5 : vector<2x128xf32>
    %c0_5 = arith.constant 0 : index
    %c0_6 = arith.constant 0 : index
    %7 = vector.load %arg6[%c0_5, %c0_6] : memref<2x128xf32, #tpu.memory_space<vmem>>, vector<2x128xf32>
    tpu.vector_store %arg6[%c0_5, %c0_6], %6 {strides = array<i32>} : memref<2x128xf32, #tpu.memory_space<vmem>>, vector<2x128xf32>,
    %c0_i32_7 = arith.constant 0 : i32
    %8 = arith.cmpi eq, %arg1, %c0_i32_7 : i32
    %9 = arith.extui %8 : i1 to i32
    %c0_i32_8 = arith.constant 0 : i32
    %10 = arith.cmpi ne, %9, %c0_i32_8 : i32
    scf.if %10 {
      %c0_9 = arith.constant 0 : index
      %c0_10 = arith.constant 0 : index
      %11 = vector.load %arg6[%c0_9, %c0_10] : memref<2x128xf32, #tpu.memory_space<vmem>>, vector<2x128xf32>
      %cst_11 = arith.constant 3.125000e-02 : f32
      %12 = vector.broadcast %cst_11 : f32 to vector<2x128xf32>
      %13 = arith.mulf %11, %12 : vector<2x128xf32>
      %c0_12 = arith.constant 0 : index
      %c0_13 = arith.constant 0 : index
      %14 = vector.load %arg3[%c0_12, %c0_13] : memref<128x128xf32, #tpu.memory_space<vmem>>, vector<128x128xf32>
      %cst_14 = arith.constant dense<0.000000e+00> : vector<2x128xf32>
      %15 = tpu.matmul %13, %14, %cst_14 {dimension_numbers = #tpu.dot_dimension_numbers<[1], [0], [0], [1], [0, 0, 1, 1], [], []>} : vector<2x128xf32>, vector<128x128xf32>, vector<2x128xf32> -> vector<2x128xf32>
      %c0_15 = arith.constant 0 : index
      %c0_16 = arith.constant 0 : index
      %16 = vector.load %arg4[%c0_15, %c0_16] : memref<1x128xf32, #tpu.memory_space<vmem>>, vector<1x128xf32>
      %17 = vector.broadcast %16 : vector<1x128xf32> to vector<2x128xf32>
      %18 = arith.addf %15, %17 : vector<2x128xf32>
      %c0_17 = arith.constant 0 : index
      %c0_18 = arith.constant 0 : index
      %19 = vector.load %arg5[%c0_17, %c0_18] : memref<2x128xf32, #tpu.memory_space<vmem>>, vector<2x128xf32>
      tpu.vector_store %arg5[%c0_17, %c0_18], %18 {strides = array<i32>} : memref<2x128xf32, #tpu.memory_space<vmem>>, vector<2x128xf32>,
    } else {
    }
    return
  }
  func.func @transform_0(%arg0: i32, %arg1: i32) -> (i32, i32, i32) {
    %c0_i32 = arith.constant 0 : i32
    %c0_i32_0 = arith.constant 0 : i32
    return %arg0, %arg1, %c0_i32 : i32, i32, i32
  }
  func.func @transform_1(%arg0: i32, %arg1: i32) -> (i32, i32) {
    %c0_i32 = arith.constant 0 : i32
    %c0_i32_0 = arith.constant 0 : i32
    %c0_i32_1 = arith.constant 0 : i32
    return %c0_i32, %c0_i32_0 : i32, i32
  }
  func.func @transform_2(%arg0: i32, %arg1: i32) -> (i32, i32) {
    %c0_i32 = arith.constant 0 : i32
    %c0_i32_0 = arith.constant 0 : i32
    %c0_i32_1 = arith.constant 0 : i32
    return %c0_i32, %c0_i32_0 : i32, i32
  }
  func.func @transform_3(%arg0: i32, %arg1: i32) -> (i32, i32) {
    %c0_i32 = arith.constant 0 : i32
    %c0_i32_0 = arith.constant 0 : i32
    return %arg0, %c0_i32 : i32, i32
  }
}

</mosaic_0001>

<bundles_post_ra>
// kernel: tpu_custom_call.1
= control target key start
LH: loop header
LB: loop body
LE: loop exit
PB: predicated region body
PF: predicated region fallthrough
CT: control target
= control target key end

     0   :  { %8 = vsyncpa [#allocation4], 0  ;;  %s409_s0 = inlined_call_operand.hbm [shape: f32[2,8,128], index: 0, kind: input, shape index: {}]   ;;  %s410_s1 = inlined_call_operand.hbm [shape: f32[128,128], index: 1, kind: input, shape index: {}]   ;;  %s411_s2 = inlined_call_operand.vmem [shape: f32[1,128], index: 2, kind: input, shape index: {}]   ;;  %s412_s3 = inlined_call_operand.hbm [shape: f32[2,128], index: 3, kind: output, shape index: {}]  }
   0x1   :  { %9 = vsyncpa [#allocation7], 0 }
   0x2   :  { %10 = vsyncpa [#allocation5], 0  ;;  %s342_s12 = smov [#allocation3]   ;;  %s270_s16 = scalar_lea.hbm %s409_s0, 256 }
   0x3   :  { %s16_s13 = sshll.u32 %s342_s12, 4  ;;  %p271_p0 = scmp.ne.s32.totalorder %s409_s0, %s270_s16  ;;  %s17_s13 = int_to_ptr.vmem [resolvable:$true] %s16_s13 }
   0x4   :  { %p274_p1 = scmp.lt.u32.totalorder %s270_s16, %s409_s0 }
   0x6   :  { %p276_p2 = pnand %p274_p1, %p271_p0 }
   0x8   :  { %279 = shalt.err (!%p276_p2)
}
   0x9   :  { %s280_s21 = scalar_lea.vmem %s17_s13, 256  ;;  %p285_p4 = scmp.lt.s32.totalorder %s17_s13, %s17_s13 }
   0xa   :  { %p281_p3 = scmp.ne.s32.totalorder %s17_s13, %s280_s21  ;;  %p286_p5 = scmp.lt.s32.totalorder %s280_s21, %s280_s21 }
   0xc   :  { %p287_p6 = por %p286_p5, %p285_p4 }
   0xe   :  { %p288_p7 = pnand %p287_p6, %p281_p3 }
  0x10   :  { %291 = shalt.err (!%p288_p7)
}
  0x11   :  { %s343_s22 = smov 128   ;;  %s344_s23 = smov 8  }
  0x12   :  { %22 = dma.hbm_to_vmem [thread:$0]  %s409_s0, 256, %s17_s13, [#allocation4], %s343_s22, %s343_s22, %s344_s23  }
  0x13   :  { %s345_s26 = smov [#allocation6]   ;;  %s292_s30 = scalar_lea.hbm %s410_s1, 2048 }
  0x14   :  { %s28_s27 = sshll.u32 %s345_s26, 4  ;;  %p293_p8 = scmp.ne.s32.totalorder %s410_s1, %s292_s30  ;;  %s29_s27 = int_to_ptr.vmem [resolvable:$true] %s28_s27 }
  0x15   :  { %p296_p9 = scmp.lt.u32.totalorder %s292_s30, %s410_s1 }
  0x17   :  { %p298_p10 = pnand %p296_p9, %p293_p8 }
  0x19   :  { %301 = shalt.err (!%p298_p10)
}
  0x1a   :  { %s302_s8 = scalar_lea.vmem %s29_s27, 2048  ;;  %p307_p12 = scmp.lt.s32.totalorder %s29_s27, %s29_s27 }
  0x1b   :  { %p303_p11 = scmp.ne.s32.totalorder %s29_s27, %s302_s8  ;;  %p308_p13 = scmp.lt.s32.totalorder %s302_s8, %s302_s8 }
  0x1d   :  { %p309_p0 = por %p308_p13, %p307_p12 }
  0x1f   :  { %p310_p1 = pnand %p309_p0, %p303_p11 }
  0x21   :  { %313 = shalt.err (!%p310_p1)
}
  0x22   :  { %34 = dma.hbm_to_vmem [thread:$0]  %s410_s1, 2048, %s29_s27, [#allocation7], %s343_s22, %s343_s22, %s344_s23  }
  0x23   :  { %336 = dma.done.wait [#allocation4], 256  }
  0x24   :  { %337 = vsyncadd [#allocation4], 4294967040 }
  0x25   :  { %338 = dma.done.wait [#allocation7], 2048  }
  0x26   :  { %339 = vsyncadd [#allocation7], 4294965248  ;;  %v346_v0 = vmov 0.0|0.0   ;;  %v347_v1 = vmov 0.0   ;;  %vm348_vm0 = vmmov 0   ;;  %v75_v2 = vld [vmem:[#allocation6] sm:$0xff] }
  0x27   :  { %238 = vmatprep.subr.bf16.mxu0 %v346_v0  ;;  %47 = vst [vmem:[#allocation2] sm:$0x3] %v347_v1  ;;  %235 = vmatprep.mubr.msk.f32.mxu0 %vm348_vm0, %v347_v1  ;;  %v76_v3 = vld [vmem:[#allocation6 + $0x8] sm:$0xff]  ;;  %v77_v4 = vld [vmem:[#allocation6 + $0x10] sm:$0xff]  ;;  %v78_v6 = vld [vmem:[#allocation6 + $0x18] sm:$0xff]  ;;  %vm65_vm1 = vcmask 1041409  }
  0x28   :  { %v239_v5 = vpack.c.bf16 %v76_v3, %v75_v2  ;;  %v242_v7 = vpack.c.bf16 %v78_v6, %v77_v4  ;;  %v79_v8 = vld [vmem:[#allocation6 + $0x20] sm:$0xff]  ;;  %v80_v9 = vld [vmem:[#allocation6 + $0x28] sm:$0xff]  ;;  %v49_v10 = vld [vmem:[#allocation3] sm:$0xff]  ;;  %s349_s11 = smov [#allocation8]  }
  0x29   :  { %v50_v11 = vld [vmem:[#allocation3 + $0x8] sm:$0xff]  ;;  %v51_v12 = vrot.slane %v49_v10, 4  ;;  %v245_v13 = vpack.c.bf16 %v80_v9, %v79_v8  ;;  %v81_v15 = vld [vmem:[#allocation6 + $0x30] sm:$0xff]  ;;  %v83_v22 = vld [vmem:[#allocation6 + $0x40] sm:$0xff]  ;;  %s175_s12 = sshll.u32 %s349_s11, 4  ;;  %s176_s12 = int_to_ptr.vmem [resolvable:$true] %s175_s12 }
  0x2a   :  { %240 = vmatpush3.bf16.msra.mxu0 %v239_v5  ;;  %v57_v14 = vrot.slane %v50_v11, 4  ;;  %v82_v16 = vld [vmem:[#allocation6 + $0x38] sm:$0xff]  ;;  %v84_v23 = vld [vmem:[#allocation6 + $0x48] sm:$0xff]  ;;  %v85_v29 = vld [vmem:[#allocation6 + $0x50] sm:$0xff]  ;;  %s314_s13 = scalar_lea.vmem %s176_s12, 32  ;;  %p319_p3 = scmp.lt.s32.totalorder %s176_s12, %s176_s12 }
  0x2b   :  { %241 = vmatprep.subr.bf16.mxu0 %v346_v0  ;;  %v52_v17 = vadd.f32 %v51_v12, %v49_v10  ;;  %v248_v20 = vpack.c.bf16 %v82_v16, %v81_v15  ;;  %v251_v27 = vpack.c.bf16 %v84_v23, %v83_v22  ;;  %v86_v30 = vld [vmem:[#allocation6 + $0x58] sm:$0xff]  ;;  %v87_v36 = vld [vmem:[#allocation6 + $0x60] sm:$0xff]  ;;  %v88_v37 = vld [vmem:[#allocation6 + $0x68] sm:$0xff]  ;;  %p315_p2 = scmp.ne.s32.totalorder %s176_s12, %s314_s13  ;;  %p320_p4 = scmp.lt.s32.totalorder %s314_s13, %s314_s13 }
  0x2c   :  { %v58_v18 = vadd.f32 %v57_v14, %v50_v11  ;;  %v254_v34 = vpack.c.bf16 %v86_v30, %v85_v29  ;;  %v257_v39 = vpack.c.bf16 %v88_v37, %v87_v36  ;;  %v89_v40 = vld [vmem:[#allocation6 + $0x70] sm:$0xff]  ;;  %v90_v41 = vld [vmem:[#allocation6 + $0x78] sm:$0xff]  ;;  %v185_v45 = vld [vmem:[%s411_s2] ss:$0 sm:$0xff] }
  0x2d   :  { %v53_v19 = vrot.slane %v52_v17, 2  ;;  %v260_v42 = vpack.c.bf16 %v90_v41, %v89_v40  ;;  %p321_p5 = por %p320_p4, %p319_p3 }
  0x2e   :  { %243 = vmatpush3.bf16.msra.mxu0 %v242_v7  ;;  %v59_v21 = vrot.slane %v58_v18, 2  ;;  %v48_v32 = vld [vmem:[#allocation2] sm:$0x3] }
  0x2f   :  { %244 = vmatprep.subr.bf16.mxu0 %v346_v0  ;;  %v54_v24 = vadd.f32 %v53_v19, %v52_v17  ;;  %p322_p6 = pnand %p321_p5, %p315_p2 }
  0x30   :  { %v60_v25 = vadd.f32 %v59_v21, %v58_v18 }
  0x31   :  { %v55_v26 = vrot.slane %v54_v24, 1 }
  0x32   :  { %246 = vmatpush3.bf16.msra.mxu0 %v245_v13  ;;  %v61_v28 = vrot.slane %v60_v25, 1 }
  0x33   :  { %247 = vmatprep.subr.bf16.mxu0 %v346_v0  ;;  %v56_v31 = vadd.f32 %v55_v26, %v54_v24 }
  0x34   :  { %v62_v33 = vadd.f32 %v61_v28, %v60_v25 }
  0x36   :  { %249 = vmatpush3.bf16.msra.mxu0 %v248_v20  ;;  %v66_v35 = vsel %vm65_vm1, %v62_v33, %v56_v31 }
  0x37   :  { %250 = vmatprep.subr.bf16.mxu0 %v346_v0  ;;  %v68_v38 = vadd.f32 %v66_v35, %v48_v32 }
  0x39   :  { %69 = vst [vmem:[#allocation2] sm:$0x3] %v68_v38 }
  0x3a   :  { %252 = vmatpush3.bf16.msra.mxu0 %v251_v27 }
  0x3b   :  { %253 = vmatprep.subr.bf16.mxu0 %v346_v0 }
  0x3e   :  { %255 = vmatpush3.bf16.msra.mxu0 %v254_v34 }
  0x3f   :  { %256 = vmatprep.subr.bf16.mxu0 %v346_v0 }
  0x40   :  { %v73_v43 = vld [vmem:[#allocation2] sm:$0x3] }
  0x41   :  { %v74_v44 = vmul.f32 0.03125, %v73_v43 }
  0x42   :  { %258 = vmatpush3.bf16.msra.mxu0 %v257_v39 }
  0x43   :  { %259 = vmatprep.subr.bf16.mxu0 %v346_v0 }
  0x46   :  { %261 = vmatpush3.bf16.msra.mxu0 %v260_v42 }
  0x49   :  { %236 = vmatmul.mubr.f32.vlgmr.msra.gmra.mrb[0].mxu0 %v74_v44 }
 0x11c   :  { %v164_v46 = vpop.f32.mrb[0].mxu0 }
 0x11d   :  { %v165_v47 = vadd.f32 %v185_v45, %v164_v46  ;;  %v237_v48 = vpop.f32.mrb[1].mxu0 }
 0x11f   :  { %168 = vst [vmem:[#allocation8] sm:$0x3] %v165_v47 }
 0x120   :  { %325 = shalt.err (!%p322_p6)
}
 0x121   :  { %s326_s16 = scalar_lea.hbm %s412_s3, 32 }
 0x122   :  { %p327_p7 = scmp.ne.s32.totalorder %s412_s3, %s326_s16  ;;  %p330_p8 = scmp.lt.u32.totalorder %s326_s16, %s412_s3 }
 0x124   :  { %p332_p9 = pnand %p330_p8, %p327_p7 }
 0x126   :  { %335 = shalt.err (!%p332_p9)
}
 0x127   :  { %178 = dma.vmem_to_hbm [thread:$0]  %s176_s12, 32, %s412_s3, [#allocation5]  }
 0x128   :  { %340 = dma.done.wait [#allocation5], 32  }
 0x129   :  { %341 = vsyncadd [#allocation5], 4294967264 }
 0x12a   :  { %182 = vsyncpa [#allocation4], 1 }
 0x12b   :  { %183 = vsyncpa [#allocation7], 1 }
 0x12c   :  { %184 = vsyncpa [#allocation5], 1 }

</bundles_post_ra>
